<compile_context>
chip_gen: v7x
topology: tpu7x:2x2x1
jax: 0.10.0
libtpu: 0.0.40
codegen_flags: <defaults>
</compile_context>

<pallas_src>
import functools

import jax
import jax.numpy as jnp
from jax import lax
from jax.experimental import pallas as pl
from jax.experimental.pallas import tpu as pltpu


def _attention_fused_kernel(num_layers, *refs):
    """One grid step == one timestep of the attention scorer.

    refs layout (num_layers > 1):
      x (B,dx) [streamed per step], context (B,dc), w0x (dx,H), w0c (dc,H),
      b_all (L,1,H), w_hid (L-1,H,H), out_w (1,H), out_b (1,1) [SMEM],
      o (T,B) [VMEM-resident output], hc0 scratch (B,H).
    num_layers == 1 drops w_hid.
    num_layers == 0:
      x, context, out_wx (1,dx), out_wc (1,dc), out_b, o, crow scratch (1,B).
    """
    t = pl.program_id(0)

    if num_layers > 0:
        if num_layers > 1:
            (x_ref, c_ref, w0x_ref, w0c_ref, b_ref, wh_ref,
             ow_ref, ob_ref, o_ref, hc0_ref) = refs
        else:
            (x_ref, c_ref, w0x_ref, w0c_ref, b_ref,
             ow_ref, ob_ref, o_ref, hc0_ref) = refs
            wh_ref = None

        # Context is constant across timesteps: do its layer-0 matmul once and
        # keep the result in a VMEM scratch that persists across grid steps.
        @pl.when(t == 0)
        def _():
            cf = c_ref[...].astype(jnp.float32)
            hc0_ref[...] = (
                jnp.dot(cf, w0c_ref[...], preferred_element_type=jnp.float32)
                + b_ref[0])

        xf = x_ref[...].astype(jnp.float32)                         # (B, dx)
        h = jnp.dot(xf, w0x_ref[...],
                    preferred_element_type=jnp.float32) + hc0_ref[...]
        h = jnp.maximum(h, 0.0)                                     # ReLU

        for l in range(1, num_layers):                              # static unroll
            h = jnp.maximum(
                jnp.dot(h, wh_ref[l - 1],
                        preferred_element_type=jnp.float32) + b_ref[l],
                0.0)

        # Output projection: contract (1,H) with (B,H) on their last dims to
        # get the lane-dense (1,B) logits row directly (no (B,1) temporary,
        # no BxB diagonal transpose).
        logits = lax.dot_general(
            ow_ref[...], h, (((1,), (1,)), ((), ())),
            preferred_element_type=jnp.float32) + ob_ref[0, 0]
    else:
        (x_ref, c_ref, owx_ref, owc_ref, ob_ref, o_ref, crow_ref) = refs

        @pl.when(t == 0)
        def _():
            cf = c_ref[...].astype(jnp.float32)
            crow_ref[...] = lax.dot_general(
                owc_ref[...], cf, (((1,), (1,)), ((), ())),
                preferred_element_type=jnp.float32)

        xf = x_ref[...].astype(jnp.float32)
        logits = (lax.dot_general(owx_ref[...], xf, (((1,), (1,)), ((), ())),
                                  preferred_element_type=jnp.float32)
                  + crow_ref[...] + ob_ref[0, 0])

    # PyTorch: .view(1, -1) -> tanh -> softmax(dim=1).  The softmax axis is the
    # batch axis (the lane axis here).  Exact divide so rows sum to 1 to f32
    # precision.
    z = jnp.tanh(logits)
    m = jnp.max(z, axis=-1, keepdims=True)
    e = jnp.exp(z - m)
    s = jnp.sum(e, axis=-1, keepdims=True)
    o_ref[pl.ds(t, 1), :] = e / s


def prepare_params(params, dx, num_layers):
    """One-time parameter prep, hoisted out of the per-call / per-step path."""
    prepped = {"out_b": params["out_b"].reshape(1, 1)}
    if num_layers > 0:
        w0, _ = params["layers"][0]
        prepped["w0x"] = w0[:dx]                                   # (dx, H)
        prepped["w0c"] = w0[dx:]                                   # (dc, H)
        prepped["b_all"] = jnp.stack(
            [b.reshape(1, -1) for _, b in params["layers"]])       # (L, 1, H)
        if num_layers > 1:
            prepped["w_hid"] = jnp.stack(
                [w for w, _ in params["layers"][1:]])              # (L-1, H, H)
        prepped["out_w"] = params["out_w"].reshape(1, -1)          # (1, H)
    else:
        ow = params["out_w"].reshape(1, -1)                        # (1, dx+dc)
        prepped["out_wx"] = ow[:, :dx]
        prepped["out_wc"] = ow[:, dx:]
    return prepped


def attention_forward_fused(xs, context, prepped, num_layers):
    """xs: (T, B, dx), context: (B, dc).  Returns (T, B); row t equals the
    PyTorch Attention.forward(xs[t], context) (a softmax over the batch)."""
    T, B, dx = xs.shape

    def resident(arr):
        # Whole-array VMEM block with a constant index_map: DMA'd once, stays
        # VMEM-resident for all T grid steps.
        return pl.BlockSpec(arr.shape, lambda t, _n=arr.ndim: (0,) * _n)

    x_spec = pl.BlockSpec((pl.Squeezed(), B, dx), lambda t: (t, 0, 0))
    smem_spec = pl.BlockSpec((1, 1), lambda t: (0, 0),
                             memory_space=pltpu.MemorySpace.SMEM)

    flat = [xs, context]
    in_specs = [x_spec, resident(context)]

    if num_layers > 0:
        H = prepped["w0x"].shape[1]
        flat += [prepped["w0x"], prepped["w0c"], prepped["b_all"]]
        in_specs += [resident(prepped["w0x"]), resident(prepped["w0c"]),
                     resident(prepped["b_all"])]
        if num_layers > 1:
            flat += [prepped["w_hid"]]
            in_specs += [resident(prepped["w_hid"])]
        flat += [prepped["out_w"]]
        in_specs += [resident(prepped["out_w"])]
        scratch = [pltpu.VMEM((B, H), jnp.float32)]   # hoisted context@W0c + b0
    else:
        flat += [prepped["out_wx"], prepped["out_wc"]]
        in_specs += [resident(prepped["out_wx"]), resident(prepped["out_wc"])]
        scratch = [pltpu.VMEM((1, B), jnp.float32)]   # hoisted context logits row

    flat += [prepped["out_b"]]
    in_specs += [smem_spec]

    kernel = functools.partial(_attention_fused_kernel, num_layers)
    return pl.pallas_call(
        kernel,
        out_shape=jax.ShapeDtypeStruct((T, B), jnp.float32),
        grid=(T,),
        in_specs=in_specs,
        # Whole (T, B) output stays VMEM-resident across the grid and is
        # written back to HBM once at the end (single slab writeback).
        out_specs=pl.BlockSpec((T, B), lambda t: (0, 0)),
        scratch_shapes=scratch,
        # The t axis carries the resident output block and the pl.when(t == 0)
        # hoist, so it must be sequential ("arbitrary").  On v7x, a leading
        # "parallel" axis over independent sequences/beams would engage the
        # second TensorCore; not applicable at this single-sequence shape.
        compiler_params=pltpu.CompilerParams(
            dimension_semantics=("arbitrary",)),
    )(*flat)


def attention_forward(x, context, prepped, num_layers):
    """Single-timestep forward matching the PyTorch module: returns (1, B)."""
    return attention_forward_fused(x[None], context, prepped, num_layers)


def init_params(key, input_size, hidden_size, num_layers, use_bias=True):
    """Deterministic xavier_uniform-style init; biases = 0 (as in reset_parameters)."""
    layers = []
    for layer in range(num_layers):
        d_in = input_size if layer == 0 else hidden_size
        key, sub = jax.random.split(key)
        limit = jnp.sqrt(6.0 / (d_in + hidden_size))
        w = jax.random.uniform(sub, (d_in, hidden_size), jnp.float32, -limit, limit)
        b = jnp.zeros((1, hidden_size), jnp.float32)
        layers.append((w, b))
    key, sub = jax.random.split(key)
    d_last = hidden_size if num_layers > 0 else input_size
    limit = jnp.sqrt(6.0 / (d_last + 1))
    out_w = jax.random.uniform(sub, (d_last, 1), jnp.float32, -limit, limit)
    out_b = jnp.zeros((1, 1), jnp.float32)
    return {"layers": layers, "out_w": out_w, "out_b": out_b}


def _reference_forward(x, context, params, num_layers):
    h = jnp.concatenate([x, context], axis=1)
    for w, b in params["layers"]:
        h = jax.nn.relu(h @ w + b)
    logits = (h @ params["out_w"] + params["out_b"]).reshape(1, -1)
    return jax.nn.softmax(jnp.tanh(logits), axis=1)


if __name__ == "__main__":
    T = 8                        # timesteps fused into one pallas_call
    B = 8                        # batch (the softmax / lane axis)
    dx, dc = 12, 20              # x / context feature sizes -> input_size = 32
    input_size = dx + dc
    hidden_size = 32

    key = jax.random.PRNGKey(0)
    kx, kc, kp = jax.random.split(key, 3)
    xs = jax.random.normal(kx, (T, B, dx), jnp.float32)
    context = jax.random.normal(kc, (B, dc), jnp.float32)

    for num_layers in (2, 1, 0):
        kp, sub = jax.random.split(kp)
        params = init_params(sub, input_size, hidden_size, num_layers)
        prepped = prepare_params(params, dx, num_layers)

        # Fused: all T timesteps in one gridded pallas_call (weights resident).
        out_fused = jax.block_until_ready(
            attention_forward_fused(xs, context, prepped, num_layers))
        assert out_fused.shape == (T, B)
        for t in range(T):
            ref_t = _reference_forward(xs[t], context, params, num_layers)
            assert jnp.allclose(out_fused[t:t + 1], ref_t,
                                atol=1e-3, rtol=1e-3), (num_layers, t)
        assert jnp.allclose(jnp.sum(out_fused, axis=1), 1.0,
                            atol=1e-4), num_layers

        # Single-step API matching Attention.forward(x, context).
        out_single = jax.block_until_ready(
            attention_forward(xs[0], context, prepped, num_layers))
        assert out_single.shape == (1, B)
        ref_0 = _reference_forward(xs[0], context, params, num_layers)
        assert jnp.allclose(out_single, ref_0, atol=1e-3, rtol=1e-3), num_layers
        assert jnp.allclose(jnp.sum(out_single), 1.0, atol=1e-4), num_layers

    print("KERNEL_OK")
</pallas_src>

<mosaic_0001>
module attributes {stable_mosaic.version = 11 : i64} {
  func.func @_attention_fused_kernel(%arg0: i32, %arg1: memref<1x8x12xf32, #tpu.memory_space<vmem>>, %arg2: memref<8x20xf32, #tpu.memory_space<vmem>>, %arg3: memref<12x32xf32, #tpu.memory_space<vmem>>, %arg4: memref<20x32xf32, #tpu.memory_space<vmem>>, %arg5: memref<2x1x32xf32, #tpu.memory_space<vmem>>, %arg6: memref<1x32x32xf32, #tpu.memory_space<vmem>>, %arg7: memref<1x32xf32, #tpu.memory_space<vmem>>, %arg8: memref<1x1xf32, #tpu.memory_space<smem>>, %arg9: memref<8x8xf32, #tpu.memory_space<vmem>>, %arg10: memref<8x32xf32, #tpu.memory_space<vmem>>) attributes {dimension_semantics = [#tpu.dimension_semantics<arbitrary>], iteration_bounds = array<i64: 8>, scalar_prefetch = 0 : i64, scratch_operands = 1 : i64, tpu.core_type = #tpu.core_type<tc>, window_params = [{transform_indices = @transform_0, window_bounds = array<i64: 1, 8, 12>}, {pipeline_mode = #tpu.pipeline_mode<synchronous>, transform_indices = @transform_1, window_bounds = array<i64: 8, 20>}, {pipeline_mode = #tpu.pipeline_mode<synchronous>, transform_indices = @transform_2, window_bounds = array<i64: 12, 32>}, {pipeline_mode = #tpu.pipeline_mode<synchronous>, transform_indices = @transform_3, window_bounds = array<i64: 20, 32>}, {pipeline_mode = #tpu.pipeline_mode<synchronous>, transform_indices = @transform_4, window_bounds = array<i64: 2, 1, 32>}, {pipeline_mode = #tpu.pipeline_mode<synchronous>, transform_indices = @transform_5, window_bounds = array<i64: 1, 32, 32>}, {pipeline_mode = #tpu.pipeline_mode<synchronous>, transform_indices = @transform_6, window_bounds = array<i64: 1, 32>}, {transform_indices = @transform_7, window_bounds = array<i64: 1, 1>}, {pipeline_mode = #tpu.pipeline_mode<synchronous>, transform_indices = @transform_8, window_bounds = array<i64: 8, 8>}]} {
    %c0_i32 = arith.constant 0 : i32
    %0 = arith.cmpi eq, %arg0, %c0_i32 : i32
    %1 = arith.extui %0 : i1 to i32
    %c0_i32_0 = arith.constant 0 : i32
    %2 = arith.cmpi ne, %1, %c0_i32_0 : i32
    scf.if %2 {
      %c0_23 = arith.constant 0 : index
      %c0_24 = arith.constant 0 : index
      %37 = vector.load %arg2[%c0_23, %c0_24] : memref<8x20xf32, #tpu.memory_space<vmem>>, vector<8x20xf32>
      %c0_25 = arith.constant 0 : index
      %c0_26 = arith.constant 0 : index
      %38 = vector.load %arg4[%c0_25, %c0_26] : memref<20x32xf32, #tpu.memory_space<vmem>>, vector<20x32xf32>
      %cst_27 = arith.constant dense<0.000000e+00> : vector<8x32xf32>
      %39 = tpu.matmul %37, %38, %cst_27 {dimension_numbers = #tpu.dot_dimension_numbers<[1], [0], [0], [1], [0, 0, 1, 1], [], []>} : vector<8x20xf32>, vector<20x32xf32>, vector<8x32xf32> -> vector<8x32xf32>
      %c0_28 = arith.constant 0 : index
      %c0_29 = arith.constant 0 : index
      %c0_30 = arith.constant 0 : index
      %40 = vector.load %arg5[%c0_28, %c0_29, %c0_30] : memref<2x1x32xf32, #tpu.memory_space<vmem>>, vector<1x1x32xf32>
      %41 = vector.shape_cast %40 : vector<1x1x32xf32> to vector<1x32xf32>
      %42 = vector.broadcast %41 : vector<1x32xf32> to vector<8x32xf32>
      %43 = arith.addf %39, %42 : vector<8x32xf32>
      %c0_31 = arith.constant 0 : index
      %c0_32 = arith.constant 0 : index
      %44 = vector.load %arg10[%c0_31, %c0_32] : memref<8x32xf32, #tpu.memory_space<vmem>>, vector<8x32xf32>
      tpu.vector_store %arg10[%c0_31, %c0_32], %43 {strides = array<i32>} : memref<8x32xf32, #tpu.memory_space<vmem>>, vector<8x32xf32>,
    } else {
    }
    %c0 = arith.constant 0 : index
    %c0_1 = arith.constant 0 : index
    %c0_2 = arith.constant 0 : index
    %3 = vector.load %arg1[%c0, %c0_1, %c0_2] : memref<1x8x12xf32, #tpu.memory_space<vmem>>, vector<1x8x12xf32>
    %4 = vector.shape_cast %3 : vector<1x8x12xf32> to vector<8x12xf32>
    %c0_3 = arith.constant 0 : index
    %c0_4 = arith.constant 0 : index
    %5 = vector.load %arg3[%c0_3, %c0_4] : memref<12x32xf32, #tpu.memory_space<vmem>>, vector<12x32xf32>
    %cst = arith.constant dense<0.000000e+00> : vector<8x32xf32>
    %6 = tpu.matmul %4, %5, %cst {dimension_numbers = #tpu.dot_dimension_numbers<[1], [0], [0], [1], [0, 0, 1, 1], [], []>} : vector<8x12xf32>, vector<12x32xf32>, vector<8x32xf32> -> vector<8x32xf32>
    %c0_5 = arith.constant 0 : index
    %c0_6 = arith.constant 0 : index
    %7 = vector.load %arg10[%c0_5, %c0_6] : memref<8x32xf32, #tpu.memory_space<vmem>>, vector<8x32xf32>
    %8 = arith.addf %6, %7 : vector<8x32xf32>
    %cst_7 = arith.constant 0.000000e+00 : f32
    %9 = vector.broadcast %cst_7 : f32 to vector<8x32xf32>
    %10 = arith.maximumf %8, %9 : vector<8x32xf32>
    %c0_8 = arith.constant 0 : index
    %c0_9 = arith.constant 0 : index
    %c0_10 = arith.constant 0 : index
    %11 = vector.load %arg6[%c0_8, %c0_9, %c0_10] : memref<1x32x32xf32, #tpu.memory_space<vmem>>, vector<1x32x32xf32>
    %12 = vector.shape_cast %11 : vector<1x32x32xf32> to vector<32x32xf32>
    %cst_11 = arith.constant dense<0.000000e+00> : vector<8x32xf32>
    %13 = tpu.matmul %10, %12, %cst_11 {dimension_numbers = #tpu.dot_dimension_numbers<[1], [0], [0], [1], [0, 0, 1, 1], [], []>} : vector<8x32xf32>, vector<32x32xf32>, vector<8x32xf32> -> vector<8x32xf32>
    %c1 = arith.constant 1 : index
    %c0_12 = arith.constant 0 : index
    %c0_13 = arith.constant 0 : index
    %14 = vector.load %arg5[%c1, %c0_12, %c0_13] : memref<2x1x32xf32, #tpu.memory_space<vmem>>, vector<1x1x32xf32>
    %15 = vector.shape_cast %14 : vector<1x1x32xf32> to vector<1x32xf32>
    %16 = vector.broadcast %15 : vector<1x32xf32> to vector<8x32xf32>
    %17 = arith.addf %13, %16 : vector<8x32xf32>
    %cst_14 = arith.constant 0.000000e+00 : f32
    %18 = vector.broadcast %cst_14 : f32 to vector<8x32xf32>
    %19 = arith.maximumf %17, %18 : vector<8x32xf32>
    %c0_15 = arith.constant 0 : index
    %c0_16 = arith.constant 0 : index
    %20 = vector.load %arg7[%c0_15, %c0_16] : memref<1x32xf32, #tpu.memory_space<vmem>>, vector<1x32xf32>
    %cst_17 = arith.constant dense<0.000000e+00> : vector<1x8xf32>
    %21 = tpu.matmul %20, %19, %cst_17 {dimension_numbers = #tpu.dot_dimension_numbers<[1], [1], [0], [0], [0, 0, 1, 0], [], []>} : vector<1x32xf32>, vector<8x32xf32>, vector<1x8xf32> -> vector<1x8xf32>
    %c0_18 = arith.constant 0 : index
    %c0_19 = arith.constant 0 : index
    %22 = memref.load %arg8[%c0_18, %c0_19] : memref<1x1xf32, #tpu.memory_space<smem>>
    %23 = vector.broadcast %22 : f32 to vector<1x8xf32>
    %24 = arith.addf %21, %23 : vector<1x8xf32>
    %25 = math.tanh %24 : vector<1x8xf32>
    %cst_20 = arith.constant dense<0xFF800000> : vector<1xf32>
    %26 = vector.multi_reduction <maximumf>, %25, %cst_20 [1] : vector<1x8xf32> to vector<1xf32>
    %27 = vector.shape_cast %26 : vector<1xf32> to vector<1x1xf32>
    %28 = vector.broadcast %27 : vector<1x1xf32> to vector<1x8xf32>
    %29 = arith.subf %25, %28 : vector<1x8xf32>
    %30 = math.exp %29 : vector<1x8xf32>
    %cst_21 = arith.constant dense<0.000000e+00> : vector<1xf32>
    %31 = vector.multi_reduction <add>, %30, %cst_21 [1] : vector<1x8xf32> to vector<1xf32>
    %32 = vector.shape_cast %31 : vector<1xf32> to vector<1x1xf32>
    %33 = vector.broadcast %32 : vector<1x1xf32> to vector<1x8xf32>
    %34 = arith.divf %30, %33 : vector<1x8xf32>
    %35 = arith.index_cast %arg0 : i32 to index
    %c0_22 = arith.constant 0 : index
    %36 = vector.load %arg9[%35, %c0_22] : memref<8x8xf32, #tpu.memory_space<vmem>>, vector<1x8xf32>
    tpu.vector_store %arg9[%35, %c0_22], %34 {strides = array<i32>} : memref<8x8xf32, #tpu.memory_space<vmem>>, vector<1x8xf32>,
    return
  }
  func.func @transform_0(%arg0: i32) -> (i32, i32, i32) {
    %c0_i32 = arith.constant 0 : i32
    %c0_i32_0 = arith.constant 0 : i32
    %c0_i32_1 = arith.constant 0 : i32
    return %arg0, %c0_i32, %c0_i32_0 : i32, i32, i32
  }
  func.func @transform_1(%arg0: i32) -> (i32, i32) {
    %c0_i32 = arith.constant 0 : i32
    %c0_i32_0 = arith.constant 0 : i32
    %c0_i32_1 = arith.constant 0 : i32
    return %c0_i32, %c0_i32_0 : i32, i32
  }
  func.func @transform_2(%arg0: i32) -> (i32, i32) {
    %c0_i32 = arith.constant 0 : i32
    %c0_i32_0 = arith.constant 0 : i32
    %c0_i32_1 = arith.constant 0 : i32
    return %c0_i32, %c0_i32_0 : i32, i32
  }
  func.func @transform_3(%arg0: i32) -> (i32, i32) {
    %c0_i32 = arith.constant 0 : i32
    %c0_i32_0 = arith.constant 0 : i32
    %c0_i32_1 = arith.constant 0 : i32
    return %c0_i32, %c0_i32_0 : i32, i32
  }
  func.func @transform_4(%arg0: i32) -> (i32, i32, i32) {
    %c0_i32 = arith.constant 0 : i32
    %c0_i32_0 = arith.constant 0 : i32
    %c0_i32_1 = arith.constant 0 : i32
    %c0_i32_2 = arith.constant 0 : i32
    return %c0_i32, %c0_i32_0, %c0_i32_1 : i32, i32, i32
  }
  func.func @transform_5(%arg0: i32) -> (i32, i32, i32) {
    %c0_i32 = arith.constant 0 : i32
    %c0_i32_0 = arith.constant 0 : i32
    %c0_i32_1 = arith.constant 0 : i32
    %c0_i32_2 = arith.constant 0 : i32
    return %c0_i32, %c0_i32_0, %c0_i32_1 : i32, i32, i32
  }
  func.func @transform_6(%arg0: i32) -> (i32, i32) {
    %c0_i32 = arith.constant 0 : i32
    %c0_i32_0 = arith.constant 0 : i32
    %c0_i32_1 = arith.constant 0 : i32
    return %c0_i32, %c0_i32_0 : i32, i32
  }
  func.func @transform_7(%arg0: i32) -> (i32, i32) {
    %c0_i32 = arith.constant 0 : i32
    %c0_i32_0 = arith.constant 0 : i32
    %c0_i32_1 = arith.constant 0 : i32
    return %c0_i32, %c0_i32_0 : i32, i32
  }
  func.func @transform_8(%arg0: i32) -> (i32, i32) {
    %c0_i32 = arith.constant 0 : i32
    %c0_i32_0 = arith.constant 0 : i32
    %c0_i32_1 = arith.constant 0 : i32
    return %c0_i32, %c0_i32_0 : i32, i32
  }
}

</mosaic_0001>

<bundles_post_ra>
// kernel: tpu_custom_call.1
= control target key start
LH: loop header
LB: loop body
LE: loop exit
PB: predicated region body
PF: predicated region fallthrough
CT: control target
= control target key end

     0   :  { %s1565_s0 = inlined_call_operand.hbm [shape: f32[8,8,12], index: 0, kind: input, shape index: {}]   ;;  %s1566_s1 = inlined_call_operand.hbm [shape: f32[8,20], index: 1, kind: input, shape index: {}]   ;;  %s1567_s2 = inlined_call_operand.hbm [shape: f32[12,32], index: 2, kind: input, shape index: {}]   ;;  %s1568_s3 = inlined_call_operand.hbm [shape: f32[20,32], index: 3, kind: input, shape index: {}]   ;;  %s1569_s4 = inlined_call_operand.vmem [shape: f32[2,1,32], index: 4, kind: input, shape index: {}]   ;;  %s1570_s5 = inlined_call_operand.hbm [shape: f32[1,32,32], index: 5, kind: input, shape index: {}]   ;;  %s1571_s6 = inlined_call_operand.vmem [shape: f32[1,32], index: 6, kind: input, shape index: {}]   ;;  %s1572_s7 = inlined_call_operand.<no memory space> [shape: f32[1,1], index: 7, kind: input, shape index: {}]   ;;  %s1573_s8 = inlined_call_operand.hbm [shape: f32[8,8], index: 8, kind: output, shape index: {}]  }
   0x1   :  { %13 = sst [smem:[#allocation3]] %s1572_s7 }
   0x2   :  { %14 = vsyncpa [#allocation5], 0 }
   0x3   :  { %16 = vsyncpa [#allocation5 + $0x1], 0 }
   0x4   :  { %17 = vsyncpa [#allocation8], 0 }
   0x5   :  { %18 = vsyncpa [#allocation11], 0 }
   0x6   :  { %19 = vsyncpa [#allocation6], 0  ;;  %s1295_s29 = smov 0   ;;  %s1297_s30 = smov 0  }
   0x7   :  { %s1299_s9 = smov 0   ;;  %s1301_s10 = smov 0  }
   0x8 LB: > { %s1232_s7 = smov [#allocation7]   ;;  %s1316_s12 = sadd.s32 4294967295, %s1230_s10   ;;  %s1230_s10 = sphi %s1301_s10, %s1591_s10   ;;  %s1226_s9 = sphi %s1299_s9, %s1590_s9   ;;  %s1222_s30 = sphi %s1297_s30, %s1589_s30   ;;  %s1218_s29 = sphi %s1295_s29, %s1588_s29  }
   0x9   : > { %s237_s11 = sshll.u32 %s1232_s7, 4  ;;  %p822_p0 = scmp.ge.s32.totalorder %s1230_s10, 1  ;;  %s238_s11 = int_to_ptr.vmem [resolvable:$true] %s237_s11 }
   0xa   : > { %p1574_p1 = scmp.eq.s32.totalorder %s1316_s12, 0  ;;  %p224_p2 = scmp.lt.s32.totalorder %s1230_s10, 9 }
   0xb   : > { %s1233_s14 = smov [#allocation10]   ;;  %s1234_s17 = smov [#allocation9]  }
   0xc   : > { %p1322_p4 = pnand %p822_p0, %p224_p2  ;;  %s260_s15 = sshll.u32 %s1233_s14, 4  ;;  %s1334_s15 = int_to_ptr.vmem [resolvable:$true] %s260_s15 }
   0xd   : > { %s247_s18 = sshll.u32 %s1234_s17, 4  ;;  %s1016_s21 = scalar_lea.hbm %s1566_s1, 128  ;;  %s1336_s18 = int_to_ptr.vmem [resolvable:$true] %s247_s18 }
   0xe   : > { %s1576_s13 = scalar_select %p1322_p4, 1, 0 }
   0xf   : > { %p936_p5 = pneg %p1322_p4  ;;  %p1017_p7 = scmp.ne.s32.totalorder %s1566_s1, %s1016_s21 }
  0x10   : > { %p1023_p11 = scmp.lt.u32.totalorder %s1016_s21, %s1566_s1 }
  0x11   : > { %p1330_p6 = pnand %p936_p5, %p1574_p1 }
  0x13   : > { %p1346_p8 = pneg %p1330_p6 }
  0x15   : > { %p1019_p9 = pnand %p1346_p8, %p1017_p7 }
  0x17   : > { %p1020_p10 = pneg %p1019_p9 }
  0x19   : > { %p1025_p12 = pnand %p1023_p11, %p1020_p10 }
  0x1b   : > { %1028 = shalt.err (!%p1025_p12)
}
  0x1c   : > { %s1029_s27 = scalar_lea.vmem %s238_s11, 128  ;;  %p1037_p5 = scmp.lt.s32.totalorder %s238_s11, %s238_s11 }
  0x1d   : > { %p1030_p13 = scmp.ne.s32.totalorder %s238_s11, %s1029_s27  ;;  %p1038_p3 = scmp.lt.s32.totalorder %s1029_s27, %s1029_s27 }
  0x1f   : > { %p1032_p0 = pnand %p1030_p13, %p1346_p8  ;;  %p1039_p1 = por %p1038_p3, %p1037_p5 }
  0x21   : > { %p1033_p2 = pneg %p1032_p0 }
  0x23   : > { %p1040_p4 = pnand %p1039_p1, %p1033_p2 }
  0x25   : > { %1043 = shalt.err (!%p1040_p4)
}
  0x26   : > { %939 = dma.hbm_to_vmem [thread:$0]  (!%p1330_p6), %s1566_s1, 128, %s238_s11, [#allocation8]  }
  0x27   : > { %s1044_s19 = scalar_lea.hbm %s1568_s3, 384 }
  0x28   : > { %p1045_p7 = scmp.ne.s32.totalorder %s1568_s3, %s1044_s19  ;;  %p1051_p1 = scmp.lt.u32.totalorder %s1044_s19, %s1568_s3 }
  0x2a   : > { %p1047_p9 = pnand %p1045_p7, %p1346_p8 }
  0x2c   : > { %p1048_p3 = pneg %p1047_p9 }
  0x2e   : > { %p1053_p4 = pnand %p1051_p1, %p1048_p3 }
  0x30   : > { %1056 = shalt.err (!%p1053_p4)
}
  0x31   : > { %s1057_s11 = scalar_lea.vmem %s1334_s15, 384  ;;  %p1065_p13 = scmp.lt.s32.totalorder %s1334_s15, %s1334_s15 }
  0x32   : > { %p1058_p10 = scmp.ne.s32.totalorder %s1334_s15, %s1057_s11  ;;  %p1066_p0 = scmp.lt.s32.totalorder %s1057_s11, %s1057_s11 }
  0x34   : > { %p1060_p11 = pnand %p1058_p10, %p1346_p8  ;;  %p1067_p2 = por %p1066_p0, %p1065_p13 }
  0x36   : > { %p1061_p12 = pneg %p1060_p11 }
  0x38   : > { %p1068_p5 = pnand %p1067_p2, %p1061_p12 }
  0x3a   : > { %1071 = shalt.err (!%p1068_p5)
}
  0x3b   : > { %s1235_s25 = smov 128   ;;  %s1236_s26 = smov 8  }
  0x3c   : > { %945 = dma.hbm_to_vmem [thread:$0]  (!%p1330_p6), %s1568_s3, 384, %s1334_s15, [#allocation11], %s1235_s25, %s1235_s25, %s1236_s26  }
  0x3d   : > { %s1072_s17 = scalar_lea.hbm %s1567_s2, 256 }
  0x3e   : > { %p1073_p7 = scmp.ne.s32.totalorder %s1567_s2, %s1072_s17  ;;  %p1079_p1 = scmp.lt.u32.totalorder %s1072_s17, %s1567_s2 }
  0x40   : > { %p1075_p9 = pnand %p1073_p7, %p1346_p8 }
  0x42   : > { %p1076_p3 = pneg %p1075_p9 }
  0x44   : > { %p1081_p4 = pnand %p1079_p1, %p1076_p3 }
  0x46   : > { %1084 = shalt.err (!%p1081_p4)
}
  0x47   : > { %s1085_s15 = scalar_lea.vmem %s1336_s18, 256  ;;  %p1093_p13 = scmp.lt.s32.totalorder %s1336_s18, %s1336_s18 }
  0x48   : > { %p1086_p10 = scmp.ne.s32.totalorder %s1336_s18, %s1085_s15  ;;  %p1094_p0 = scmp.lt.s32.totalorder %s1085_s15, %s1085_s15 }
  0x4a   : > { %p1088_p11 = pnand %p1086_p10, %p1346_p8  ;;  %p1095_p2 = por %p1094_p0, %p1093_p13 }
  0x4c   : > { %p1089_p12 = pneg %p1088_p11 }
  0x4e   : > { %p1096_p5 = pnand %p1095_p2, %p1089_p12 }
  0x50   : > { %1099 = shalt.err (!%p1096_p5)
}
  0x51   : > { %942 = dma.hbm_to_vmem [thread:$0]  (!%p1330_p6), %s1567_s2, 256, %s1336_s18, [#allocation8], %s1235_s25, %s1235_s25, %s1236_s26  }
  0x52   : > { %s1237_s27 = smov [#allocation12]   ;;  %s1100_s17 = scalar_lea.hbm %s1570_s5, 512 }
  0x53   : > { %s276_s28 = sshll.u32 %s1237_s27, 4  ;;  %p1101_p7 = scmp.ne.s32.totalorder %s1570_s5, %s1100_s17  ;;  %s277_s28 = int_to_ptr.vmem [resolvable:$true] %s276_s28 }
  0x54   : > { %p1107_p1 = scmp.lt.u32.totalorder %s1100_s17, %s1570_s5 }
  0x55   : > { %p1103_p9 = pnand %p1101_p7, %p1346_p8 }
  0x57   : > { %p1104_p3 = pneg %p1103_p9 }
  0x59   : > { %p1109_p4 = pnand %p1107_p1, %p1104_p3 }
  0x5b   : > { %1112 = shalt.err (!%p1109_p4)
}
  0x5c   : > { %s1113_s18 = scalar_lea.vmem %s277_s28, 512  ;;  %p1121_p13 = scmp.lt.s32.totalorder %s277_s28, %s277_s28 }
  0x5d   : > { %p1114_p10 = scmp.ne.s32.totalorder %s277_s28, %s1113_s18  ;;  %p1122_p0 = scmp.lt.s32.totalorder %s1113_s18, %s1113_s18 }
  0x5f   : > { %p1116_p11 = pnand %p1114_p10, %p1346_p8  ;;  %p1123_p2 = por %p1122_p0, %p1121_p13 }
  0x61   : > { %p1117_p12 = pneg %p1116_p11 }
  0x63   : > { %p1124_p5 = pnand %p1123_p2, %p1117_p12 }
  0x65   : > { %1127 = shalt.err (!%p1124_p5)
}
  0x66   : > { %948 = dma.hbm_to_vmem [thread:$0]  (!%p1330_p6), %s1570_s5, 512, %s277_s28, [#allocation11], %s1235_s25, %s1235_s25, %s1236_s26  }
  0x67   : > { %s1436_s16 = sadd.s32 1, %s1230_s10   ;;  %s32_s24 = sadd.s32 1, %s1226_s9 }
  0x68   : > { %s29_s11 = ssub.s32 %s1230_s10, %s1436_s16  ;;  %p39_p8 = scmp.ne.s32.totalorder %s1226_s9, %s1222_s30 }
  0x69   : > { %p30_p7 = scmp.eq.s32.totalorder %s29_s11, 0  ;;  %p40_p9 = scmp.eq.s32.totalorder %s1230_s10, 0 }
  0x6a   : > { %p45_p3 = scmp.ne.s32.totalorder %s1222_s30, %s1218_s29  ;;  %p957_p1 = scmp.lt.s32.totalorder %s1230_s10, 8 }
  0x6b   : > { %s1448_s27 = scalar_select %p30_p7, %s1226_s9, %s32_s24  }
  0x6c   : > { %p41_p4 = por %p40_p9, %p39_p8  ;;  %p1579_p10 = scmp.eq.s32.totalorder %s1316_s12, 0 }
  0x6d   : > { %s296_s14 = sand.u32 1, %s1226_s9   ;;  %s829_s25 = sshll.u32 %s1230_s10, 7 }
  0x6e   : > { %p1452_p11 = por %p1579_p10, %p45_p3  ;;  %s828_s26 = sshll.u32 %s296_s14, 3 }
  0x6f   : > { %s1461_s19 = scalar_lea.hbm %s1565_s0, %s829_s25  ;;  %s300_s29 = scalar_lea.vmem [#allocation4], %s828_s26 }
  0x70   : > { %s307_s20 = sshll.u32 %s300_s29, 4  ;;  %p1463_p6 = pnand %p957_p1, %p41_p4  ;;  %s1467_s20 = int_to_ptr.vmem [resolvable:$true] %s307_s20 }
  0x71   : > { %s297_s22 = scalar_lea.sflag [#allocation5], %s296_s14  ;;  %s1128_s18 = scalar_lea.hbm %s1461_s19, 128 }
  0x72   : > { %p1129_p12 = scmp.ne.s32.totalorder %s1461_s19, %s1128_s18  ;;  %p1130_p13 = pneg %p1463_p6 }
  0x73   : > { %s1133_s24 = scalar_lea.hbm %s1565_s0, 1024  ;;  %p1134_p5 = scmp.lt.u32.totalorder %s1461_s19, %s1565_s0 }
  0x74   : > { %p1131_p0 = pnand %p1130_p13, %p1129_p12  ;;  %p1135_p8 = scmp.lt.u32.totalorder %s1133_s24, %s1128_s18 }
  0x75   : > { %p1137_p9 = scmp.lt.u32.totalorder %s1128_s18, %s1461_s19 }
  0x76   : > { %p1132_p2 = pneg %p1131_p0  ;;  %p1136_p7 = por %p1135_p8, %p1134_p5 }
  0x78   : > { %p1138_p3 = por %p1137_p9, %p1136_p7 }
  0x7a   : > { %p1139_p1 = pnand %p1138_p3, %p1132_p2 }
  0x7c   : > { %1142 = shalt.err (!%p1139_p1)
}
  0x7d   : > { %s1143_s14 = scalar_lea.vmem %s1467_s20, 128  ;;  %s1238_s26 = smov [#allocation4]  }
  0x7e   : > { %p1144_p4 = scmp.ne.s32.totalorder %s1467_s20, %s1143_s14  ;;  %s1148_s28 = sshll.u32 %s1238_s26, 4  ;;  %s1149_s28 = int_to_ptr.vmem [resolvable:$false] %s1148_s28 }
  0x7f   : > { %s1150_s17 = scalar_lea.vmem %s1149_s28, 256  ;;  %p1151_p0 = scmp.lt.s32.totalorder %s1467_s20, %s1149_s28 }
  0x80   : > { %p1146_p10 = pnand %p1144_p4, %p1130_p13  ;;  %p1152_p5 = scmp.lt.s32.totalorder %s1150_s17, %s1143_s14 }
  0x82   : > { %p1147_p12 = pneg %p1146_p10  ;;  %p1153_p8 = por %p1152_p5, %p1151_p0 }
  0x84   : > { %p1154_p7 = pnand %p1153_p8, %p1147_p12 }
  0x86   : > { %1157 = shalt.err (!%p1154_p7)
}
  0x87   : > { %952 = dma.hbm_to_vmem [thread:$0]  (!%p1463_p6), %s1461_s19, 128, %s1467_s20, %s297_s22  }
  0x88   : > { %p1582_p2 = scmp.ne.s32.totalorder %s1576_s13, 0 }
  0x89   : > { %s318_s29 = sand.u32 (!%p1582_p2), 1, %s1222_s30  }
  0x8a   : > { %316 = sbr.rel (%p1582_p2) target bundleno = 1372 (0x55c), region = 52  ;;  %s1497_s18 = sshll.u32 (!%p1582_p2), %s318_s29, 3 }
  0x8b   : > { %s319_s15 = scalar_lea.sflag (!%p1582_p2), [#allocation5], %s318_s29  ;;  %s322_s23 = scalar_lea.vmem (!%p1582_p2), [#allocation4], %s1497_s18 }
  0x91   : > { %1201 = dma.done.wait (%p1452_p11), %s319_s15, 128  }
  0x92   : > { %1203 = vsyncadd (%p1452_p11), %s319_s15, 4294967168  ;;  %p1583_p13 = scmp.eq.s32.totalorder %s1316_s12, 0 }
  0x94   : > { %1205 = dma.done.wait (%p1583_p13), [#allocation8], 384   ;;  %p1584_p6 = pmov %p1583_p13 }
  0x96   : > { %1207 = vsyncadd (%p1584_p6), [#allocation8], 4294966912  ;;  %p1585_p9 = pmov %p1584_p6 }
  0x97   : > { %p1586_p3 = pmov %p1584_p6 }
  0x98   : > { %1209 = dma.done.wait (%p1585_p9), [#allocation11], 896  }
  0x99   : > { %1211 = vsyncadd (%p1586_p3), [#allocation11], 4294966400  ;;  %p1587_p1 = scmp.ne.s32.totalorder %s1316_s12, 0 }
  0x9a   : > { %v371_v0 = vld [vmem:[#allocation10] sm:$0xff] (!%p1587_p1)  ;;  %v372_v1 = vld [vmem:[#allocation10 + $0x8] sm:$0xff] (!%p1587_p1)  ;;  %v1239_v2 = vmov (!%p1587_p1), 0.0|0.0   ;;  %vm1240_vm0 = vmmov (!%p1587_p1), 0   ;;  %v1241_v4 = vmov (!%p1587_p1), 0.0   ;;  %vm385_vm1 = vcmask (!%p1587_p1), 1043456  }
  0x9b   : > { %369 = sbr.rel (%p1587_p1) target bundleno = 377 (0x179), region = 76  ;;  %901 = vmatprep.subr.bf16.mxu0 (!%p1587_p1), %v1239_v2  ;;  %v902_v3 = vpack.c.bf16 (!%p1587_p1), %v372_v1, %v371_v0  ;;  %875 = vmatprep.mubr.msk.f32.mxu0 (!%p1587_p1), %vm1240_vm0, %v1241_v4  ;;  %v373_v5 = vld [vmem:[#allocation10 + $0x10] sm:$0xf] (!%p1587_p1)  ;;  %v370_v6 = vld [vmem:[#allocation7] sm:$0xff] (!%p1587_p1)  ;;  %vm381_vm2 = vcmask (!%p1587_p1), 162816   ;;  %vm459_vm3 = vcmask (!%p1587_p1), 261120  }
  0x9c   : > { %v837_v7 = vld [vmem:[%s1569_s4] ss:$0 sm:$0xff] (!%p1587_p1) }
  0x9d   : > { %903 = vmatpush3.bf16.msra.mxu0 (!%p1587_p1), %v902_v3 }
  0x9e   : > { %873 = vmatprep.subr.mxu0 (!%p1587_p1), %v1241_v4 }
  0xa1   : > { %874 = vmatpush3.msk.msra.mxu0 (!%p1587_p1), %vm385_vm1, %v373_v5 }
  0xa2   : > { %876 = vmatmul.mubr.msk.f32.vlgmr.msra.gmra.mrb[0].mxu0 %vm381_vm2, %v370_v6 }
 0x175   : > { %v455_v8 = vpop.f32.mrb[0].mxu0 }
 0x176   : > { %v456_v9 = vadd.f32 %v837_v7, %v455_v8  ;;  %v877_v10 = vpop.f32.mrb[1].mxu0 }
 0x178   : > { %460 = vst.msk [vmem:[#allocation2] sm:$0xff] %vm459_vm3, %v456_v9 }
 0x179 PF: > { %v462_v11 = vld [vmem:[#allocation9] sm:$0xff]  ;;  %v463_v12 = vld [vmem:[#allocation9 + $0x8] sm:$0xf]  ;;  %vm469_vm4 = vcmask 1043456   ;;  %v1242_v13 = vmov 0.0|0.0   ;;  %vm1243_vm5 = vmmov 1  }
 0x17a   : > { %904 = vmatprep.subr.bf16.mxu0 %v1242_v13  ;;  %v905_v14 = vpack.c.bf16 %v463_v12, %v462_v11  ;;  %vm906_vm6 = vmpackc.low %vm469_vm4, %vm1243_vm5  ;;  %908 = vmatprep.subr.bf16.mxu1 %v1242_v13  ;;  %v544_v15 = vld [vmem:[#allocation12] sm:$0xff]  ;;  %vm1244_vm7 = vmmov 0   ;;  %v1245_v16 = vmov 0.0   ;;  %v545_v17 = vld [vmem:[#allocation12 + $0x8] sm:$0xff]  ;;  %vm465_vm8 = vcmask 97280   ;;  %s632_s24 = sld [smem:[#allocation3]] }
 0x17b   : > { %882 = vmatprep.mubr.msk.f32.mxu0 %vm1244_vm7, %v1245_v16  ;;  %893 = vmatprep.mubr.msk.f32.mxu1 %vm1244_vm7, %v1245_v16  ;;  %v461_v18 = vld [vmem:[%s322_s23] sm:$0xff]  ;;  %v909_v19 = vpack.c.bf16 %v545_v17, %v544_v15  ;;  %v546_v20 = vld [vmem:[#allocation12 + $0x10] sm:$0xff]  ;;  %v547_v21 = vld [vmem:[#allocation12 + $0x18] sm:$0xff]  ;;  %vm556_vm9 = vcmask 261120   ;;  %vm711_vm10 = vcmask 57344   ;;  %s1246_s11 = smov [#allocation13]  }
 0x17c   : > { %907 = vmatpush3.bf16.msk.msra.mxu0 %vm906_vm6, %v905_v14  ;;  %v912_v22 = vpack.c.bf16 %v547_v21, %v546_v20  ;;  %v843_v28 = vld [vmem:[%s1569_s4 + $0x1] ss:$0 sm:$0xff]  ;;  %v631_v33 = vld [vmem:[%s1571_s6] sm:$0x1]  ;;  %s732_s25 = sshll.u32 %s1246_s11, 4  ;;  %p962_p11 = scmp.eq.s32.totalorder %s1316_s12, 7  ;;  %s733_s25 = int_to_ptr.vmem [resolvable:$true] %s732_s25 }
 0x17d   : > { %896 = vmatprep.subr.mxu0 %v1245_v16  ;;  %910 = vmatpush3.bf16.msra.mxu1 %v909_v19  ;;  %s852_s14 = scalar_lea.vmem [#allocation13], %s1230_s10  ;;  %s1158_s26 = scalar_lea.vmem %s733_s25, 128 }
 0x17e   : > { %911 = vmatprep.subr.bf16.mxu1 %v1242_v13  ;;  %p1159_p4 = scmp.ne.s32.totalorder %s733_s25, %s1158_s26  ;;  %p1165_p0 = scmp.lt.s32.totalorder %s733_s25, %s733_s25 }
 0x17f   : > { %883 = vmatmul.mubr.msk.f32.vlgmr.msra.gmra.mrb[0].mxu0 %vm465_vm8, %v461_v18  ;;  %v464_v23 = vld [vmem:[#allocation2] sm:$0xff]  ;;  %p1166_p5 = scmp.lt.s32.totalorder %s1158_s26, %s1158_s26 }
 0x180   : > { %898 = vmatprep.mubr.msk.f32.mxu0 %vm1244_vm7, %v1245_v16  ;;  %v633_v34 = vstv %s632_s24  ;;  %p1160_p10 = pnand %p1159_p4, %p962_p11 }
 0x181   : > { %913 = vmatpush3.bf16.msra.mxu1 %v912_v22  ;;  %p1167_p8 = por %p1166_p5, %p1165_p0 }
 0x182   : > { %p1161_p12 = pneg %p1160_p10 }
 0x184   : > { %p1168_p7 = pnand %p1167_p8, %p1161_p12 }
 0x252   : > { %v539_v24 = vpop.f32.mrb[0].mxu0 }
 0x253   : > { %v540_v25 = vadd.f32 %v539_v24, %v464_v23  ;;  %v884_v26 = vpop.f32.mrb[1].mxu0 }
 0x255   : > { %v543_v27 = vmax.f32 %v540_v25, 0.0 }
 0x257   : > { %894 = vmatmul.mubr.msk.f32.vlgmr.msra.gmra.mrb[0].mxu1 %vm556_vm9, %v543_v27 }
 0x32a   : > { %v626_v29 = vpop.f32.mrb[0].mxu1 }
 0x32b   : > { %v627_v30 = vadd.f32 %v843_v28, %v626_v29  ;;  %v895_v31 = vpop.f32.mrb[1].mxu1 }
 0x32d   : > { %v630_v32 = vmax.f32 %v627_v30, 0.0 }
 0x32f   : > { %897 = vmatpush3.xpose.msk.msra.mxu0 %vm556_vm9, %v630_v32 }
 0x332   : > { %899 = vmatmul.mubr.msk.f32.vlgmr.msra.gmra.mrb[2].mxu0 %vm556_vm9, %v631_v33 }
 0x405   : > { %v706_v35 = vpop.f32.mrb[2].mxu0 }
 0x406   : > { %v707_v36 = vadd.f32 %v706_v35, %v633_v34  ;;  %v900_v37 = vpop.f32.mrb[3].mxu0 }
 0x408   : > { %1010 = vtanh.f32 %v707_v36 }
 0x412   : > { %v1011_v38 = vpop.eup %1010 }
 0x413   : > { %v712_v39 = vsel %vm711_vm10, %v1011_v38, -inf }
 0x414   : > { %713 = vmax.xlane.f32.xlu0 %v712_v39 }
 0x4a1   : > { %v714_v40 = vpop.xlane.xlu0 %713 }
 0x4a2   : > { %v715_v41 = vsub.f32 %v1011_v38, %v714_v40 }
 0x4a4   : > { %v716_v42 = vmul.f32 1.442695, %v715_v41 }
 0x4a6   : > { %1012 = vpow2.f32 %v716_v42 }
 0x4b0   : > { %v1013_v43 = vpop.eup %1012 }
 0x4b1   : > { %v718_v44 = vsel %vm711_vm10, %v1013_v43, 0.0 }
 0x4b2   : > { %719 = vadd.xlane.f32.xlu0 %v718_v44 }
 0x53f   : > { %v720_v45 = vpop.xlane.xlu0 %719 }
 0x540   : > { %1014 = vrcp.f32 %v720_v45 }
 0x54a   : > { %v1015_v46 = vpop.eup %1014 }
 0x54b   : > { %v722_v47 = vmul.f32 %v1015_v46, %v1013_v43 }
 0x54d   : > { %854 = vst.msk [vmem:[%s852_s14 - $0x1] sm:$0x1] %vm711_vm10, %v722_v47 }
 0x54e   : > { %1171 = shalt.err (!%p1168_p7)
}
 0x54f   : > { %s1172_s29 = scalar_lea.hbm %s1573_s8, 128 }
 0x550   : > { %p1173_p2 = scmp.ne.s32.totalorder %s1573_s8, %s1172_s29  ;;  %p1178_p9 = scmp.lt.u32.totalorder %s1172_s29, %s1573_s8 }
 0x552   : > { %p1174_p13 = pnand %p1173_p2, %p962_p11 }
 0x554   : > { %p1175_p6 = pneg %p1174_p13 }
 0x556   : > { %p1180_p3 = pnand %p1178_p9, %p1175_p6 }
 0x558   : > { %1183 = shalt.err (!%p1180_p3)
}
 0x559   : > { %933 = dma.vmem_to_hbm [thread:$0]  (%p962_p11), %s733_s25, 128, %s1573_s8, [#allocation6]  }
 0x55a   : > { %1213 = dma.done.wait (%p962_p11), [#allocation6], 128  }
 0x55b   : > { %1215 = vsyncadd (%p962_p11), [#allocation6], 4294967168 }
 0x55c PF: > { %p22_p1 = scmp.ge.s32.totalorder %s1436_s16, 10   ;;  %s1588_s29 = smov %s1222_s30 }
 0x55d   : > { %s1589_s30 = smov %s1226_s9  ;;  %s1590_s9 = smov %s1448_s27 }
 0x55e   : > { %s1591_s10 = smov %s1436_s16  ;;  %24 = sbr.rel (!%p22_p1) target bundleno = 8 (0x8), region = 111 }
 0x565   :  { %745 = vsyncpa [#allocation5], 1 }
 0x566   :  { %747 = vsyncpa [#allocation5 + $0x1], 1 }
 0x567   :  { %748 = vsyncpa [#allocation8], 1 }
 0x568   :  { %749 = vsyncpa [#allocation11], 1 }
 0x569   :  { %750 = vsyncpa [#allocation6], 1 }
 0x56a   :  { %752 = vsyncpa [#allocation6 + $0x1], 1 }

</bundles_post_ra>
